<compile_context>
chip_gen: v5e
topology: v5e:2x2
jax: 0.10.0
libtpu: 0.0.40
codegen_flags: <defaults>
</compile_context>

<pallas_src>
import functools

import jax
import jax.numpy as jnp
from jax.experimental import pallas as pl
from jax.experimental.pallas import tpu as pltpu

_LANE = 128
_SUBLANE = 8


def _round_up(n, m):
    return (n + m - 1) // m * m


def _vmem_capacity_bytes():
    """Per-TensorCore VMEM capacity; conservative 64 MiB fallback (v7x)."""
    try:
        cap = int(pltpu.get_tpu_info().vmem_capacity_bytes)
        if cap > 0:
            return cap
    except Exception:
        pass
    return 64 * 1024 * 1024


def _block_spec(shape, index_map, buffer_count=None):
    """BlockSpec, optionally single-buffered for grid-resident operands."""
    if buffer_count is not None:
        try:
            return pl.BlockSpec(shape, index_map,
                                pipeline_mode=pl.Buffered(buffer_count))
        except TypeError:  # older/newer API without pipeline_mode: default buffering
            pass
    return pl.BlockSpec(shape, index_map)


def adapter_kernel(x_ref, wd_ref, bd_ref, wu_ref, bu_ref, o_ref, *, scale,
                   add_residual, mxu_dtype, precision):
    x = x_ref[...]                                      # (tm, Dp), native dtype
    x_mxu = x if x.dtype == mxu_dtype else x.astype(mxu_dtype)
    # down = relu(x @ Wd + bd)   -- MXU, f32 accumulation
    down = jnp.dot(x_mxu, wd_ref[...], preferred_element_type=jnp.float32,
                   precision=precision)
    down = jnp.maximum(down + bd_ref[...], 0.0)          # bd is f32
    # up = down @ Wu + bu
    up = jnp.dot(down.astype(wu_ref.dtype), wu_ref[...],
                 preferred_element_type=jnp.float32, precision=precision)
    up = up + bu_ref[...]                                # bu is f32
    if scale != 1.0:                                     # static Python check
        up = up * scale
    if add_residual:
        up = up + x                                      # lazy dtype promotion
    o_ref[...] = up.astype(o_ref.dtype)


def prepare_adapter_weights(params, depth_id=-1, mxu_dtype=jnp.bfloat16):
    """Slice one depth's weights, cast matmul operands, pad D to 128 if needed.

    Call once per depth (e.g. at init) and reuse — this hoists the weight
    pad/cast HBM copies out of the per-token forward path.
    """
    wd = params["down_proj"][depth_id]                    # (D, R)
    bd = params["down_bias"][depth_id]                    # (R,)
    wu = params["up_proj"][depth_id]                      # (R, D)
    bu = params["up_bias"][depth_id]                      # (D,)
    D, R = wd.shape
    Dp = _round_up(D, _LANE)

    wd_p = wd.astype(mxu_dtype)
    wu_p = wu.astype(mxu_dtype)
    bu_p = bu.astype(jnp.float32)
    if Dp != D:  # only when D is not already lane-dense
        wd_p = jnp.pad(wd_p, ((0, Dp - D), (0, 0)))
        wu_p = jnp.pad(wu_p, ((0, 0), (0, Dp - D)))
        bu_p = jnp.pad(bu_p, ((0, Dp - D),))
    bd_p = bd.astype(jnp.float32).reshape(1, R)
    bu_p = bu_p.reshape(1, Dp)
    return wd_p, bd_p, wu_p, bu_p


def adapter_apply(x, wd_p, bd_p, wu_p, bu_p, *, scale=1.0, add_residual=True,
                  tm=512, precision=None):
    """x: (batch, seq, dim); weights from prepare_adapter_weights()."""
    B, S, D = x.shape
    M = B * S
    dtype = x.dtype
    itemsize = jnp.dtype(dtype).itemsize
    Dp, R = wd_p.shape
    mxu_itemsize = jnp.dtype(wd_p.dtype).itemsize

    x2 = x.reshape(M, D)
    if Dp != D:
        # Only glue copy in the whole path, and only for D % 128 != 0.
        x2 = jnp.pad(x2, ((0, 0), (0, Dp - D)))

    # ---- generation-aware VMEM budget & row-tile selection ----
    capacity = _vmem_capacity_bytes()
    budget = int(0.7 * capacity)                       # ~90 MiB v5e/v6e, ~45 MiB v7x
    weight_bytes = 2 * Dp * R * mxu_itemsize + (R + Dp) * 4
    cast_bytes = 2 * Dp if jnp.dtype(dtype) != jnp.dtype(wd_p.dtype) else 0
    # double-buffered x + out tiles, f32 `up`/`down` temps, optional bf16 x copy
    per_row = 4 * Dp * itemsize + 4 * (Dp + R) + cast_bytes
    avail = max(budget - weight_bytes, _SUBLANE * per_row)   # guard huge weights
    max_tm = max(_SUBLANE, (avail // per_row) // _SUBLANE * _SUBLANE)
    tm_eff = min(tm, _round_up(M, _SUBLANE), max_tm)
    tm_eff = max(_SUBLANE, tm_eff // _SUBLANE * _SUBLANE)
    # Megacore (v7x has 2 TCs): make sure the parallel axis has >= 2 steps
    # whenever there is enough work to split.  Harmless on v5e/v6e.
    if M > _SUBLANE and pl.cdiv(M, tm_eff) < 2:
        tm_eff = max(_SUBLANE, _round_up(pl.cdiv(M, 2), _SUBLANE))
    grid = (pl.cdiv(M, tm_eff),)

    footprint = tm_eff * per_row + weight_bytes
    vmem_limit = int(min(capacity - 8 * 2**20,
                         max(32 * 2**20, int(1.4 * footprint))))

    cost = pl.CostEstimate(
        flops=4 * M * Dp * R,                              # two matmuls
        transcendentals=0,
        bytes_accessed=2 * M * Dp * itemsize + weight_bytes,
    )

    out = pl.pallas_call(
        functools.partial(adapter_kernel, scale=float(scale),
                          add_residual=bool(add_residual),
                          mxu_dtype=jnp.dtype(wd_p.dtype), precision=precision),
        out_shape=jax.ShapeDtypeStruct((M, Dp), dtype),
        grid_spec=pltpu.PrefetchScalarGridSpec(
            num_scalar_prefetch=0,
            grid=grid,
            in_specs=[
                _block_spec((tm_eff, Dp), lambda i: (i, 0)),             # x rows
                _block_spec((Dp, R), lambda i: (0, 0), buffer_count=1),  # down_proj
                _block_spec((1, R), lambda i: (0, 0), buffer_count=1),   # down_bias
                _block_spec((R, Dp), lambda i: (0, 0), buffer_count=1),  # up_proj
                _block_spec((1, Dp), lambda i: (0, 0), buffer_count=1),  # up_bias
            ],
            out_specs=pl.BlockSpec((tm_eff, Dp), lambda i: (i, 0)),
        ),
        compiler_params=pltpu.CompilerParams(
            dimension_semantics=("parallel",),
            vmem_limit_bytes=vmem_limit),
        cost_estimate=cost,
    )(x2, wd_p, bd_p, wu_p, bu_p)

    if Dp != D:
        out = out[:, :D]
    return out.reshape(B, S, D)


def continual_adapter_forward(x, params, depth_id=-1, scale=1.0,
                              add_residual=True, tm=512,
                              mxu_dtype=jnp.bfloat16, precision=None):
    """Convenience wrapper: slice weights for `depth_id` and apply the kernel.

    NOTE: by default the two matmuls run on bf16 operands with f32
    accumulation (fast path); pass mxu_dtype=jnp.float32 (and optionally
    precision=jax.lax.Precision.HIGHEST) for full-precision math.
    """
    wd_p, bd_p, wu_p, bu_p = prepare_adapter_weights(params, depth_id, mxu_dtype)
    return adapter_apply(x, wd_p, bd_p, wu_p, bu_p, scale=scale,
                         add_residual=add_residual, tm=tm, precision=precision)


def init_params(key, depth, dim, rank):
    """Deterministic parameter init (shapes match the PyTorch module).

    NOTE: PyTorch reset_parameters() uses kaiming_normal for down_proj and
    zeros elsewhere; here up_proj / biases get small deterministic random
    values so the fused matmul path is actually exercised.
    """
    k1, k2, k3, k4 = jax.random.split(key, 4)
    std_down = (1.0 / (3.0 * dim)) ** 0.5   # kaiming_normal_(a=sqrt(5))
    return {
        "down_proj": std_down * jax.random.normal(k1, (depth, dim, rank),
                                                  jnp.float32),
        "down_bias": 0.01 * jax.random.normal(k2, (depth, rank), jnp.float32),
        "up_proj": 0.02 * jax.random.normal(k3, (depth, rank, dim),
                                            jnp.float32),
        "up_bias": 0.01 * jax.random.normal(k4, (depth, dim), jnp.float32),
    }


def reference_forward(x, params, depth_id=-1, scale=1.0, add_residual=True):
    wd = params["down_proj"][depth_id]
    bd = params["down_bias"][depth_id]
    wu = params["up_proj"][depth_id]
    bu = params["up_bias"][depth_id]
    down = jnp.maximum(x @ wd + bd, 0.0)
    up = (down @ wu + bu) * scale
    return up + x if add_residual else up


def _rel_err(out, ref):
    return float(jnp.max(jnp.abs(out - ref)) / (jnp.max(jnp.abs(ref)) + 1e-6))


# TODO(synk): adapter_layernorm=True path (with its unusual `/ (var + 1e-5)`
# normalization and eval-mode unsqueeze(-1) broadcasting) is not implemented;
# the default adapter_layernorm=False forward path is what the kernel covers.

if __name__ == "__main__":
    key = jax.random.PRNGKey(0)

    # --- 1) small correctness check (D not a multiple of 128 -> D-pad path) ---
    depth, dim, rank = 3, 32, 8
    batch, seq = 2, 8
    kx, kp = jax.random.split(key)
    x = jax.random.normal(kx, (batch, seq, dim), jnp.float32)
    params = init_params(kp, depth, dim, rank)

    out = jax.block_until_ready(
        continual_adapter_forward(x, params, depth_id=-1, scale=1.0,
                                  add_residual=True))
    ref = reference_forward(x, params, depth_id=-1, scale=1.0,
                            add_residual=True)
    assert out.shape == (batch, seq, dim)
    assert _rel_err(out, ref) < 2e-2, f"small-shape mismatch {_rel_err(out, ref)}"

    # --- 2) lane-dense, multi-step grid, hoisted weights + jit-ed apply ---
    depth2, dim2, rank2 = 2, 256, 64
    batch2, seq2 = 4, 512
    kx2, kp2 = jax.random.split(jax.random.PRNGKey(1))
    x2 = jax.random.normal(kx2, (batch2, seq2, dim2), jnp.float32)
    params2 = init_params(kp2, depth2, dim2, rank2)
    w2 = prepare_adapter_weights(params2, depth_id=0)          # hoisted once
    apply2 = jax.jit(functools.partial(adapter_apply, scale=0.5,
                                       add_residual=True))
    out2 = jax.block_until_ready(apply2(x2, *w2))
    ref2 = reference_forward(x2, params2, depth_id=0, scale=0.5,
                             add_residual=True)
    assert out2.shape == (batch2, seq2, dim2)
    assert _rel_err(out2, ref2) < 2e-2, f"large-shape mismatch {_rel_err(out2, ref2)}"

    # --- 3) ragged M (M % 8 != 0, boundary-block clipping), no residual ---
    depth3, dim3, rank3 = 2, 128, 8
    batch3, seq3 = 3, 5
    kx3, kp3 = jax.random.split(jax.random.PRNGKey(2))
    x3 = jax.random.normal(kx3, (batch3, seq3, dim3), jnp.float32)
    params3 = init_params(kp3, depth3, dim3, rank3)
    out3 = jax.block_until_ready(
        continual_adapter_forward(x3, params3, depth_id=1, scale=1.0,
                                  add_residual=False))
    ref3 = reference_forward(x3, params3, depth_id=1, scale=1.0,
                             add_residual=False)
    assert out3.shape == (batch3, seq3, dim3)
    assert _rel_err(out3, ref3) < 2e-2, f"ragged-M mismatch {_rel_err(out3, ref3)}"

    print("KERNEL_OK")
</pallas_src>

<mosaic_0001>
module attributes {stable_mosaic.version = 11 : i64} {
  func.func @adapter_kernel(%arg0: i32, %arg1: memref<8x128xf32, #tpu.memory_space<vmem>>, %arg2: memref<128x8xbf16, #tpu.memory_space<vmem>>, %arg3: memref<1x8xf32, #tpu.memory_space<vmem>>, %arg4: memref<8x128xbf16, #tpu.memory_space<vmem>>, %arg5: memref<1x128xf32, #tpu.memory_space<vmem>>, %arg6: memref<8x128xf32, #tpu.memory_space<vmem>>) attributes {dimension_semantics = [#tpu.dimension_semantics<parallel>], iteration_bounds = array<i64: 2>, scalar_prefetch = 0 : i64, scratch_operands = 0 : i64, tpu.core_type = #tpu.core_type<tc>, window_params = [{transform_indices = @transform_0, window_bounds = array<i64: 8, 128>}, {pipeline_mode = #tpu.pipeline_mode<synchronous>, transform_indices = @transform_1, window_bounds = array<i64: 128, 8>}, {pipeline_mode = #tpu.pipeline_mode<synchronous>, transform_indices = @transform_2, window_bounds = array<i64: 1, 8>}, {pipeline_mode = #tpu.pipeline_mode<synchronous>, transform_indices = @transform_3, window_bounds = array<i64: 8, 128>}, {pipeline_mode = #tpu.pipeline_mode<synchronous>, transform_indices = @transform_4, window_bounds = array<i64: 1, 128>}, {transform_indices = @transform_5, window_bounds = array<i64: 8, 128>}]} {
    %c0 = arith.constant 0 : index
    %c0_0 = arith.constant 0 : index
    %0 = vector.load %arg1[%c0, %c0_0] : memref<8x128xf32, #tpu.memory_space<vmem>>, vector<8x128xf32>
    %1 = arith.truncf %0 : vector<8x128xf32> to vector<8x128xbf16>
    %c0_1 = arith.constant 0 : index
    %c0_2 = arith.constant 0 : index
    %2 = vector.load %arg2[%c0_1, %c0_2] : memref<128x8xbf16, #tpu.memory_space<vmem>>, vector<128x8xbf16>
    %cst = arith.constant dense<0.000000e+00> : vector<8x8xf32>
    %3 = tpu.matmul %1, %2, %cst {dimension_numbers = #tpu.dot_dimension_numbers<[1], [0], [0], [1], [0, 0, 1, 1], [], []>} : vector<8x128xbf16>, vector<128x8xbf16>, vector<8x8xf32> -> vector<8x8xf32>
    %c0_3 = arith.constant 0 : index
    %c0_4 = arith.constant 0 : index
    %4 = vector.load %arg3[%c0_3, %c0_4] : memref<1x8xf32, #tpu.memory_space<vmem>>, vector<1x8xf32>
    %5 = vector.broadcast %4 : vector<1x8xf32> to vector<8x8xf32>
    %6 = arith.addf %3, %5 : vector<8x8xf32>
    %cst_5 = arith.constant 0.000000e+00 : f32
    %7 = vector.broadcast %cst_5 : f32 to vector<8x8xf32>
    %8 = arith.maximumf %6, %7 : vector<8x8xf32>
    %9 = arith.truncf %8 : vector<8x8xf32> to vector<8x8xbf16>
    %c0_6 = arith.constant 0 : index
    %c0_7 = arith.constant 0 : index
    %10 = vector.load %arg4[%c0_6, %c0_7] : memref<8x128xbf16, #tpu.memory_space<vmem>>, vector<8x128xbf16>
    %cst_8 = arith.constant dense<0.000000e+00> : vector<8x128xf32>
    %11 = tpu.matmul %9, %10, %cst_8 {dimension_numbers = #tpu.dot_dimension_numbers<[1], [0], [0], [1], [0, 0, 1, 1], [], []>} : vector<8x8xbf16>, vector<8x128xbf16>, vector<8x128xf32> -> vector<8x128xf32>
    %c0_9 = arith.constant 0 : index
    %c0_10 = arith.constant 0 : index
    %12 = vector.load %arg5[%c0_9, %c0_10] : memref<1x128xf32, #tpu.memory_space<vmem>>, vector<1x128xf32>
    %13 = vector.broadcast %12 : vector<1x128xf32> to vector<8x128xf32>
    %14 = arith.addf %11, %13 : vector<8x128xf32>
    %15 = arith.addf %14, %0 : vector<8x128xf32>
    %c0_11 = arith.constant 0 : index
    %c0_12 = arith.constant 0 : index
    %16 = vector.load %arg6[%c0_11, %c0_12] : memref<8x128xf32, #tpu.memory_space<vmem>>, vector<8x128xf32>
    tpu.vector_store %arg6[%c0_11, %c0_12], %15 {strides = array<i32>} : memref<8x128xf32, #tpu.memory_space<vmem>>, vector<8x128xf32>,
    return
  }
  func.func @transform_0(%arg0: i32) -> (i32, i32) {
    %c0_i32 = arith.constant 0 : i32
    %c0_i32_0 = arith.constant 0 : i32
    return %arg0, %c0_i32 : i32, i32
  }
  func.func @transform_1(%arg0: i32) -> (i32, i32) {
    %c0_i32 = arith.constant 0 : i32
    %c0_i32_0 = arith.constant 0 : i32
    %c0_i32_1 = arith.constant 0 : i32
    return %c0_i32, %c0_i32_0 : i32, i32
  }
  func.func @transform_2(%arg0: i32) -> (i32, i32) {
    %c0_i32 = arith.constant 0 : i32
    %c0_i32_0 = arith.constant 0 : i32
    %c0_i32_1 = arith.constant 0 : i32
    return %c0_i32, %c0_i32_0 : i32, i32
  }
  func.func @transform_3(%arg0: i32) -> (i32, i32) {
    %c0_i32 = arith.constant 0 : i32
    %c0_i32_0 = arith.constant 0 : i32
    %c0_i32_1 = arith.constant 0 : i32
    return %c0_i32, %c0_i32_0 : i32, i32
  }
  func.func @transform_4(%arg0: i32) -> (i32, i32) {
    %c0_i32 = arith.constant 0 : i32
    %c0_i32_0 = arith.constant 0 : i32
    %c0_i32_1 = arith.constant 0 : i32
    return %c0_i32, %c0_i32_0 : i32, i32
  }
  func.func @transform_5(%arg0: i32) -> (i32, i32) {
    %c0_i32 = arith.constant 0 : i32
    %c0_i32_0 = arith.constant 0 : i32
    return %arg0, %c0_i32 : i32, i32
  }
}

</mosaic_0001>

<bundles_post_ra>
// kernel: tpu_custom_call.1
= control target key start
LH: loop header
LB: loop body
LE: loop exit
PB: predicated region body
PF: predicated region fallthrough
CT: control target
= control target key end

     0   :  { %10 = vsyncpa [#allocation3], 0  ;;  %s713_s0 = inlined_call_operand.vmem [shape: f32[16,128], index: 0, kind: input, shape index: {}]   ;;  %s714_s1 = inlined_call_operand.vmem [shape: bf16[128,8], index: 1, kind: input, shape index: {}]   ;;  %s715_s2 = inlined_call_operand.vmem [shape: f32[1,8], index: 2, kind: input, shape index: {}]   ;;  %s716_s3 = inlined_call_operand.vmem [shape: bf16[8,128], index: 3, kind: input, shape index: {}]   ;;  %s717_s4 = inlined_call_operand.vmem [shape: f32[1,128], index: 4, kind: input, shape index: {}]   ;;  %s718_s5 = inlined_call_operand.hbm [shape: f32[16,128], index: 5, kind: output, shape index: {}]  }
   0x1   :  { %12 = vsyncpa [#allocation3 + $0x1], 0  ;;  %s595_s18 = smov 0   ;;  %s597_s19 = smov 0  }
   0x2   :  { %s599_s20 = smov 0   ;;  %s601_s21 = smov 0  }
   0x3 LB: > { %s616_s22 = sadd.s32 4294967295, %s563_s21   ;;  %s409_s23 = sadd.s32 4294967294, %s563_s21   ;;  %s563_s21 = sphi %s601_s21, %s724_s21   ;;  %s559_s20 = sphi %s599_s20, %s723_s20   ;;  %s555_s19 = sphi %s597_s19, %s722_s19   ;;  %s551_s18 = sphi %s595_s18, %s721_s18  }
   0x4   : > { %s620_s24 = sadd.s32 1, %s563_s21   ;;  %s135_s25 = sadd.s32 1, %s559_s20 }
   0x5   : > { %s132_s26 = ssub.s32 %s563_s21, %s620_s24  ;;  %p145_p0 = scmp.ne.s32.totalorder %s559_s20, %s555_s19 }
   0x6   : > { %p133_p1 = scmp.eq.s32.totalorder %s132_s26, 0  ;;  %p146_p2 = scmp.eq.s32.totalorder %s616_s22, 1 }
   0x7   : > { %p151_p3 = scmp.ne.s32.totalorder %s555_s19, %s551_s18  ;;  %p152_p4 = scmp.eq.s32.totalorder %s409_s23, 1 }
   0x8   : > { %s631_s27 = scalar_select %p133_p1, %s559_s20, %s135_s25  }
   0x9   : > { %p633_p5 = por %p146_p2, %p145_p0  ;;  %p637_p6 = por %p152_p4, %p151_p3 }
   0xa   : > { %p412_p7 = scmp.ge.s32.totalorder %s563_s21, 1  ;;  %p189_p8 = scmp.lt.s32.totalorder %s563_s21, 3 }
   0xc   : > { %p190_p9 = pnand %p412_p7, %p189_p8 }
   0xd   : > { %p216_p10 = scmp.lt.s32.totalorder (!%p190_p9), %s616_s22, 1  ;;  %s213_s14 = sand.u32 (!%p190_p9), 1, %s555_s19  }
   0xe   : > { %193 = sbr.rel (%p190_p9) target bundleno = 317 (0x13d), region = 40  ;;  %s449_s16 = sshll.u32 (!%p190_p9), %s616_s22, 3 }
   0xf   : > { %s345_s30 = scalar_lea.hbm (!%p190_p9), %s718_s5, %s449_s16  ;;  %s335_s9 = scalar_lea.sflag (!%p190_p9), [#allocation3], %s213_s14 }
  0x10   : > { %s349_s8 = sshll.u32 (!%p190_p9), %s345_s30, 4  ;;  %s521_s13 = scalar_lea.hbm (!%p190_p9), %s718_s5, 16  ;;  %s350_s8 = int_to_ptr.hbm [resolvable:$true] %s349_s8 }
  0x13   : > { %v459_v0 = vld [vmem:[%s714_s1 + $0x38] sm:$0xff]  ;;  %v458_v1 = vld [vmem:[%s714_s1 + $0x30] sm:$0xff]  ;;  %v457_v2 = vld [vmem:[%s714_s1 + $0x28] sm:$0xff]  ;;  %s217_s15 = scalar_select %p216_p10, %s616_s22, 1  ;;  %vm315_vm0 = vcmask 1043456   ;;  %vm311_vm1 = vcmask 64512  }
  0x14   : > { %291 = vmatpush.bf16.msra.mxu0 %v459_v0  ;;  %v456_v3 = vld [vmem:[%s714_s1 + $0x20] sm:$0xff]  ;;  %v455_v4 = vld [vmem:[%s714_s1 + $0x18] sm:$0xff]  ;;  %v454_v5 = vld [vmem:[%s714_s1 + $0x10] sm:$0xff]  ;;  %s515_s22 = sshra.s32 %s350_s8, 4  ;;  %s516_s22 = int_to_ptr.hbm [resolvable:$true] %s515_s22 }
  0x15   : > { %s414_s23 = sshll.u32 %s217_s15, 3  ;;  %v453_v6 = vld [vmem:[%s714_s1 + $0x8] sm:$0xff]  ;;  %v452_v7 = vld [vmem:[%s714_s1] sm:$0xff]  ;;  %s413_s15 = sshll.u32 %s213_s14, 3 }
  0x16   : > { %s219_s7 = scalar_lea.vmem %s713_s0, %s414_s23  ;;  %v306_v10 = vld [vmem:[%s716_s3] sm:$0xf]  ;;  %s215_s6 = scalar_lea.vmem [#allocation2], %s413_s15 }
  0x17   : > { %v221_v8 = vld [vmem:[%s219_s7] sm:$0xff]  ;;  %v317_v11 = vsel %vm315_vm0, %v306_v10, 0  ;;  %s347_s7 = sshll.u32 %s215_s6, 4  ;;  %s517_s10 = scalar_lea.hbm %s516_s22, 8  ;;  %s348_s7 = int_to_ptr.vmem [resolvable:$true] %s347_s7 }
  0x18   : > { %292 = vmatpush.bf16.msra.mxu0 %v458_v1  ;;  %v222_v9 = vpack.c.bf16 %v221_v8, %v221_v8  ;;  %326 = vmatpush.bf16.msra.mxu1 %v317_v11  ;;  %v499_v12 = vld [vmem:[%s715_s2] ss:$0 sm:$0xff]  ;;  %p518_p11 = scmp.ne.s32.totalorder %s516_s22, %s517_s10  ;;  %p522_p0 = scmp.lt.s32.totalorder %s516_s22, %s718_s5 }
  0x19   : > { %v500_v18 = vld [vmem:[%s717_s4] ss:$0 sm:$0xff]  ;;  %p523_p1 = scmp.lt.s32.totalorder %s521_s13, %s517_s10 }
  0x1a   : > { %p519_p12 = pnand %p518_p11, %p633_p5 }
  0x1b   : > { %p524_p2 = por %p523_p1, %p522_p0 }
  0x1c   : > { %293 = vmatpush.bf16.msra.mxu0 %v457_v2  ;;  %p520_p13 = pneg %p519_p12 }
  0x1e   : > { %p525_p3 = pnand %p524_p2, %p520_p13 }
  0x20   : > { %294 = vmatpush.bf16.msra.mxu0 %v456_v3 }
  0x24   : > { %295 = vmatpush.bf16.msra.mxu0 %v455_v4 }
  0x28   : > { %296 = vmatpush.bf16.msra.mxu0 %v454_v5 }
  0x2c   : > { %297 = vmatpush.bf16.msra.mxu0 %v453_v6 }
  0x30   : > { %298 = vmatpush.bf16.msra.mxu0 %v452_v7 }
  0x33   : > { %299 = vmatmul.bf16.vlgmr.msra.gmra.mxu0 %v222_v9 }
  0xb0   : > { %v300_v13 = vpop.f32.mrf.mxu0 }
  0xb1   : > { %v301_v14 = vadd.f32 %v499_v12, %v300_v13 }
  0xb3   : > { %v304_v15 = vmax.f32 %v301_v14, 0.0 }
  0xb5   : > { %v305_v16 = vpack.c.bf16 %v304_v15, %v304_v15 }
  0xb7   : > { %447 = vmatmul.msk.bf16.vlgmr.msra.gmra.mxu1 %vm311_vm1, %v305_v16 }
  0xb8   : > { %v302_v17 = vpop.f32.mrf.mxu0 }
 0x134   : > { %v328_v19 = vpop.f32.mrf.mxu1 }
 0x135   : > { %v329_v20 = vadd.f32 %v500_v18, %v328_v19 }
 0x137   : > { %v332_v21 = vadd.f32 %v329_v20, %v221_v8 }
 0x139   : > { %333 = vst [vmem:[%s215_s6] sm:$0xff] %v332_v21 }
 0x13a   : > { %528 = shalt.err (!%p525_p3)
}
 0x13b   : > { %460 = dma.vmem_to_hbm [thread:$0]  (%p633_p5), %s348_s7, 128, %s350_s8, %s335_s9  }
 0x13c   : > { %v330_v22 = vpop.f32.mrf.mxu1 }
 0x13d PF: > { %p466_p4 = scmp.ge.s32.totalorder %s563_s21, 2  ;;  %s361_s14 = sand.u32 1, %s551_s18  }
 0x13e   : > { %s362_s17 = scalar_lea.sflag [#allocation3], %s361_s14 }
 0x13f   : > { %p463_p7 = pnand %p466_p4, %p637_p6 }
 0x141   : > { %p464_p8 = pneg %p463_p7 }
 0x143   : > { %546 = dma.done.wait (%p464_p8), %s362_s17, 128  }
 0x144   : > { %548 = vsyncadd (%p464_p8), %s362_s17, 4294967168  ;;  %p15_p9 = scmp.ge.s32.totalorder %s620_s24, 4   ;;  %s721_s18 = smov %s555_s19 }
 0x145   : > { %s722_s19 = smov %s559_s20  ;;  %s723_s20 = smov %s631_s27 }
 0x146   : > { %s724_s21 = smov %s620_s24  ;;  %17 = sbr.rel (!%p15_p9) target bundleno = 3 (0x3), region = 75 }
 0x14b   :  { %368 = vsyncpa [#allocation3], 1 }
 0x14c   :  { %370 = vsyncpa [#allocation3 + $0x1], 1 }

</bundles_post_ra>
